<compile_context>
chip_gen: v6e
topology: v6e:2x2x1
jax: 0.10.0
libtpu: 0.0.40
codegen_flags: <defaults>
</compile_context>

<pallas_src>
import jax
import jax.numpy as jnp
from jax.experimental import pallas as pl
from jax.experimental.pallas import tpu as pltpu


def _round_up(x: int, m: int) -> int:
    return (x + m - 1) // m * m


def _unembed_kernel(x_ref, w_ref, b_ref, o_ref, acc_ref):
    """One (tm, tn) output tile; grid axis 2 loops over d_model (reduction)."""
    k = pl.program_id(2)

    @pl.when(k == 0)
    def _():
        acc_ref[...] = jnp.zeros_like(acc_ref)

    acc_ref[...] += jnp.dot(
        x_ref[...], w_ref[...], preferred_element_type=jnp.float32
    )

    @pl.when(k == pl.num_programs(2) - 1)
    def _():
        # Add bias (broadcast over rows) once, write out in output dtype.
        o_ref[...] = (acc_ref[...] + b_ref[...]).astype(o_ref.dtype)


@jax.jit
def unembed(x, w_u, b_u):
    """x: [batch, posn, d_model]; w_u: [d_model, d_vocab]; b_u: [d_vocab]."""
    batch, posn, d_model = x.shape
    d_vocab = w_u.shape[1]
    M = batch * posn
    out_dtype = x.dtype

    # ---- shape-adaptive tile selection (trace-time, static) ----------------
    # tm: as large as sensible so W_U is re-streamed as few times as possible.
    tm = min(256, _round_up(M, 8))
    # tn: lane-dense, 128-aligned, wide output stores.
    tn = min(1024, _round_up(d_vocab, 128))
    # tk: take the whole reduction in one grid step when it fits comfortably.
    if d_model <= 2048:
        tk = _round_up(d_model, 8)
    else:
        tk = 1024

    M_pad = _round_up(M, tm)
    N_pad = _round_up(d_vocab, tn)
    K_pad = _round_up(d_model, tk)

    # ---- pad (zero padding is exact for matmul + zero bias), cast ----------
    x2d = x.reshape(M, d_model)
    if (M_pad, K_pad) != (M, d_model):
        x2d = jnp.pad(x2d, ((0, M_pad - M), (0, K_pad - d_model)))
    w = w_u
    if (K_pad, N_pad) != (d_model, d_vocab):
        w = jnp.pad(w, ((0, K_pad - d_model), (0, N_pad - d_vocab)))
    b2d = b_u.reshape(1, d_vocab).astype(jnp.float32)
    if N_pad != d_vocab:
        b2d = jnp.pad(b2d, ((0, 0), (0, N_pad - d_vocab)))

    # bf16 inputs, f32 accumulation (bias stays f32).
    x2d = x2d.astype(jnp.bfloat16)
    w = w.astype(jnp.bfloat16)

    grid = (M_pad // tm, N_pad // tn, K_pad // tk)

    cost = pl.CostEstimate(
        flops=2 * M_pad * K_pad * N_pad,
        transcendentals=0,
        bytes_accessed=(
            x2d.size * 2                                   # bf16 x
            + w.size * 2                                   # bf16 W_U
            + b2d.size * 4                                 # f32 bias
            + M_pad * N_pad * jnp.dtype(out_dtype).itemsize  # output
        ),
    )

    out2d = pl.pallas_call(
        _unembed_kernel,
        out_shape=jax.ShapeDtypeStruct((M_pad, N_pad), out_dtype),
        grid_spec=pltpu.PrefetchScalarGridSpec(
            num_scalar_prefetch=0,
            grid=grid,
            in_specs=[
                pl.BlockSpec((tm, tk), lambda i, j, k: (i, k)),  # x tile
                pl.BlockSpec((tk, tn), lambda i, j, k: (k, j)),  # W_U tile
                pl.BlockSpec((1, tn), lambda i, j, k: (0, j)),   # bias tile
            ],
            out_specs=pl.BlockSpec((tm, tn), lambda i, j, k: (i, j)),
            scratch_shapes=[pltpu.VMEM((tm, tn), jnp.float32)],
        ),
        compiler_params=pltpu.CompilerParams(
            dimension_semantics=("parallel", "parallel", "arbitrary"),
            vmem_limit_bytes=48 * 1024 * 1024,
        ),
        cost_estimate=cost,
    )(x2d, w, b2d)

    return out2d[:M, :d_vocab].reshape(batch, posn, d_vocab)


if __name__ == "__main__":
    # Small config consistent with the module's forward.
    batch, posn, d_model, d_vocab = 2, 8, 32, 128
    init_range = 0.02

    key = jax.random.PRNGKey(0)
    kx, kw = jax.random.split(key)

    # Deterministic params (matches nn.init.normal_(std=init_range) + zero bias).
    W_U = init_range * jax.random.normal(kw, (d_model, d_vocab), dtype=jnp.float32)
    b_U = jnp.zeros((d_vocab,), dtype=jnp.float32)

    x = jax.random.normal(kx, (batch, posn, d_model), dtype=jnp.float32)

    out = unembed(x, W_U, b_U)
    out = jax.block_until_ready(out)

    # Reference check (plain f32 JAX einsum); kernel uses bf16 inputs with f32
    # accumulation, so tolerances are loosened accordingly.
    ref = jnp.einsum("bpd,dv->bpv", x, W_U) + b_U
    assert out.shape == (batch, posn, d_vocab)
    assert jnp.allclose(out, ref, atol=1e-2, rtol=1e-2), (
        float(jnp.max(jnp.abs(out - ref)))
    )

    print("KERNEL_OK")
</pallas_src>

<mosaic_0001>
module attributes {stable_mosaic.version = 11 : i64} {
  func.func @_unembed_kernel(%arg0: i32, %arg1: i32, %arg2: i32, %arg3: memref<16x32xbf16, #tpu.memory_space<vmem>>, %arg4: memref<32x128xbf16, #tpu.memory_space<vmem>>, %arg5: memref<1x128xf32, #tpu.memory_space<vmem>>, %arg6: memref<16x128xf32, #tpu.memory_space<vmem>>, %arg7: memref<16x128xf32, #tpu.memory_space<vmem>>) attributes {dimension_semantics = [#tpu.dimension_semantics<parallel>, #tpu.dimension_semantics<parallel>, #tpu.dimension_semantics<arbitrary>], iteration_bounds = array<i64: 1, 1, 1>, scalar_prefetch = 0 : i64, scratch_operands = 1 : i64, tpu.core_type = #tpu.core_type<tc>, window_params = [{transform_indices = @transform_0, window_bounds = array<i64: 16, 32>}, {transform_indices = @transform_1, window_bounds = array<i64: 32, 128>}, {transform_indices = @transform_2, window_bounds = array<i64: 1, 128>}, {transform_indices = @transform_3, window_bounds = array<i64: 16, 128>}]} {
    %c0_i32 = arith.constant 0 : i32
    %0 = arith.cmpi eq, %arg2, %c0_i32 : i32
    %1 = arith.extui %0 : i1 to i32
    %c0_i32_0 = arith.constant 0 : i32
    %2 = arith.cmpi ne, %1, %c0_i32_0 : i32
    scf.if %2 {
      %cst_10 = arith.constant 0.000000e+00 : f32
      %12 = vector.broadcast %cst_10 : f32 to vector<16x128xf32>
      %c0_11 = arith.constant 0 : index
      %c0_12 = arith.constant 0 : index
      %13 = vector.load %arg7[%c0_11, %c0_12] : memref<16x128xf32, #tpu.memory_space<vmem>>, vector<16x128xf32>
      tpu.vector_store %arg7[%c0_11, %c0_12], %12 {strides = array<i32>} : memref<16x128xf32, #tpu.memory_space<vmem>>, vector<16x128xf32>,
    } else {
    }
    %c0 = arith.constant 0 : index
    %c0_1 = arith.constant 0 : index
    %3 = vector.load %arg7[%c0, %c0_1] : memref<16x128xf32, #tpu.memory_space<vmem>>, vector<16x128xf32>
    %c0_2 = arith.constant 0 : index
    %c0_3 = arith.constant 0 : index
    %4 = vector.load %arg3[%c0_2, %c0_3] : memref<16x32xbf16, #tpu.memory_space<vmem>>, vector<16x32xbf16>
    %c0_4 = arith.constant 0 : index
    %c0_5 = arith.constant 0 : index
    %5 = vector.load %arg4[%c0_4, %c0_5] : memref<32x128xbf16, #tpu.memory_space<vmem>>, vector<32x128xbf16>
    %cst = arith.constant dense<0.000000e+00> : vector<16x128xf32>
    %6 = tpu.matmul %4, %5, %cst {dimension_numbers = #tpu.dot_dimension_numbers<[1], [0], [0], [1], [0, 0, 1, 1], [], []>} : vector<16x32xbf16>, vector<32x128xbf16>, vector<16x128xf32> -> vector<16x128xf32>
    %7 = arith.addf %3, %6 : vector<16x128xf32>
    %c0_6 = arith.constant 0 : index
    %c0_7 = arith.constant 0 : index
    %8 = vector.load %arg7[%c0_6, %c0_7] : memref<16x128xf32, #tpu.memory_space<vmem>>, vector<16x128xf32>
    tpu.vector_store %arg7[%c0_6, %c0_7], %7 {strides = array<i32>} : memref<16x128xf32, #tpu.memory_space<vmem>>, vector<16x128xf32>,
    %c0_i32_8 = arith.constant 0 : i32
    %9 = arith.cmpi eq, %arg2, %c0_i32_8 : i32
    %10 = arith.extui %9 : i1 to i32
    %c0_i32_9 = arith.constant 0 : i32
    %11 = arith.cmpi ne, %10, %c0_i32_9 : i32
    scf.if %11 {
      %c0_10 = arith.constant 0 : index
      %c0_11 = arith.constant 0 : index
      %12 = vector.load %arg7[%c0_10, %c0_11] : memref<16x128xf32, #tpu.memory_space<vmem>>, vector<16x128xf32>
      %c0_12 = arith.constant 0 : index
      %c0_13 = arith.constant 0 : index
      %13 = vector.load %arg5[%c0_12, %c0_13] : memref<1x128xf32, #tpu.memory_space<vmem>>, vector<1x128xf32>
      %14 = vector.broadcast %13 : vector<1x128xf32> to vector<16x128xf32>
      %15 = arith.addf %12, %14 : vector<16x128xf32>
      %c0_14 = arith.constant 0 : index
      %c0_15 = arith.constant 0 : index
      %16 = vector.load %arg6[%c0_14, %c0_15] : memref<16x128xf32, #tpu.memory_space<vmem>>, vector<16x128xf32>
      tpu.vector_store %arg6[%c0_14, %c0_15], %15 {strides = array<i32>} : memref<16x128xf32, #tpu.memory_space<vmem>>, vector<16x128xf32>,
    } else {
    }
    return
  }
  func.func @transform_0(%arg0: i32, %arg1: i32, %arg2: i32) -> (i32, i32) {
    %c0_i32 = arith.constant 0 : i32
    return %arg0, %arg2 : i32, i32
  }
  func.func @transform_1(%arg0: i32, %arg1: i32, %arg2: i32) -> (i32, i32) {
    %c0_i32 = arith.constant 0 : i32
    return %arg2, %arg1 : i32, i32
  }
  func.func @transform_2(%arg0: i32, %arg1: i32, %arg2: i32) -> (i32, i32) {
    %c0_i32 = arith.constant 0 : i32
    %c0_i32_0 = arith.constant 0 : i32
    return %c0_i32, %arg1 : i32, i32
  }
  func.func @transform_3(%arg0: i32, %arg1: i32, %arg2: i32) -> (i32, i32) {
    %c0_i32 = arith.constant 0 : i32
    return %arg0, %arg1 : i32, i32
  }
}

</mosaic_0001>

<bundles_post_ra>
// kernel: unembed.1
= control target key start
LH: loop header
LB: loop body
LE: loop exit
PB: predicated region body
PF: predicated region fallthrough
CT: control target
= control target key end

     0   :  { %v174_v1 = vmov 0.0   ;;  %vm175_vm0 = vmmov 0   ;;  %s214_s0 = inlined_call_operand.vmem [shape: bf16[16,32], index: 0, kind: input, shape index: {}]   ;;  %s215_s1 = inlined_call_operand.vmem [shape: bf16[32,128], index: 1, kind: input, shape index: {}]   ;;  %s216_s2 = inlined_call_operand.vmem [shape: f32[1,128], index: 2, kind: input, shape index: {}]   ;;  %s217_s3 = inlined_call_operand.hbm [shape: f32[16,128], index: 3, kind: output, shape index: {}]  }
   0x1   :  { %v149_v0 = vld [vmem:[%s215_s1 + $0x8] sm:$0xff]   ;;  %136 = vmatprep.subr.bf16.mxu0 %v174_v1  ;;  %v150_v2 = vld [vmem:[%s215_s1] sm:$0xff]   ;;  %140 = vmatprep.mubr.msk.bf16.mxu0 %vm175_vm0, %v174_v1 }
   0x2   :  { %137 = vmatpush3.bf16.msra.mxu0 %v149_v0 }
   0x3   :  { %138 = vmatprep.subr.bf16.mxu0 %v174_v1 }
   0x4   :  { %8 = vsyncpa [#allocation4], 0  ;;  %v151_v3 = vld [vmem:[%s214_s0] sm:$0xff]   ;;  %vm47_vm1 = vcmask 261120   ;;  %s176_s20 = smov [#allocation3]  }
   0x5   :  { %v132_v4 = vld [vmem:[%s216_s2] ss:$0 sm:$0xff]  ;;  %s117_s21 = sshll.u32 %s176_s20, 4  ;;  %s118_s21 = int_to_ptr.vmem [resolvable:$true] %s117_s21 }
   0x6   :  { %139 = vmatpush3.bf16.msra.mxu0 %v150_v2  ;;  %s152_s1 = scalar_lea.vmem %s118_s21, 256  ;;  %p157_p1 = scmp.lt.s32.totalorder %s118_s21, %s118_s21 }
   0x7   :  { %p153_p0 = scmp.ne.s32.totalorder %s118_s21, %s152_s1  ;;  %p158_p2 = scmp.lt.s32.totalorder %s152_s1, %s152_s1 }
   0x9   :  { %141 = vmatmul.mubr.msk.bf16.vlgmr.msra.gmra.mxu0 %vm47_vm1, %v151_v3  ;;  %p159_p3 = por %p158_p2, %p157_p1 }
   0xb   :  { %p160_p4 = pnand %p159_p3, %p153_p0 }
  0xc9   :  { %v85_v5 = vpop.f32.mrf.mxu0 }
  0xca   :  { %v108_v6 = vadd.f32 %v132_v4, %v85_v5 }
  0xcb   :  { %v142_v7 = vpop.f32.mrf.mxu0 }
  0xcc   :  { %110 = vst [vmem:[#allocation3] sm:$0xff] %v108_v6 }
  0xcd   :  { %v88_v8 = vpop.f32.mrf.mxu0 }
  0xce   :  { %v109_v9 = vadd.f32 %v132_v4, %v88_v8 }
  0xcf   :  { %v143_v10 = vpop.f32.mrf.mxu0 }
  0xd0   :  { %111 = vst [vmem:[#allocation3 + $0x8] sm:$0xff] %v109_v9 }
  0xd1   :  { %163 = shalt.err (!%p160_p4)
}
  0xd2   :  { %s177_s0 = smov 128   ;;  %s178_s2 = smov 8  }
  0xd3   :  { %123 = dma.vmem_to_hbm [thread:$0]  %s118_s21, 256, %s217_s3, [#allocation4], %s177_s0, %s177_s0, %s178_s2  }
  0xd4   :  { %172 = dma.done.wait [#allocation4], 256  }
  0xd5   :  { %173 = vsyncadd [#allocation4], 4294967040 }
  0xd6   :  { %127 = vsyncpa [#allocation4], 1 }

</bundles_post_ra>
